<compile_context>
chip_gen: v6e
topology: v6e:2x2x1
jax: 0.10.0
libtpu: 0.0.40
codegen_flags: <defaults>
</compile_context>

<pallas_src>
import math
import jax
import jax.numpy as jnp
from jax.experimental import pallas as pl
from jax.experimental.pallas import tpu as pltpu

# Module-default dimensions (match IndependentLabeler.__init__ defaults)
JOINTS_EMBED_DIM = 256   # joints_embed_dim
AUDIO_EMBED_DIM = 512    # audio_embed_dim
HIDDEN = 128             # hidden_size
NUM_CLASSES = 4          # len(['outside', 'begin', 'inside', 'end'])
OUT_PAD = 128            # class dim zero-padded to a full 128-lane register for lane-dense stores
TM_CAP = 1024            # max row tile (multiple of 128)
VMEM_LIMIT_BYTES = 32 * 1024 * 1024   # raises v5e's 16 MiB scoped default; <= v7x physical 64 MiB


def _device_kind():
    try:
        return jax.devices()[0].device_kind.lower()
    except Exception:
        return ""


_KIND = _device_kind()
# 256-wide MXU generations (v6e / v7x): merge the per-head layer-2 matmuls into one block-diagonal
# 256-wide matmul. On 128x128-MXU chips (v5e and older) keep them split.
MERGE_LAYER2 = ("v6" in _KIND) or ("v7" in _KIND)
# Chips with 2 TensorCores per chip: keep >= 4 grid steps so both cores get >= 2 tiles each.
TWO_TENSORCORES = ("v7" in _KIND) or ("v4" in _KIND) or ("v5p" in _KIND)


# ----------------------------------------------------------------------------- kernels

def _heads_kernel_merged(e_ref, a_ref, w1, b1, aw1, ab1, w2c, b2c, w3c, b3c, out_ref):
    """v6e / v7x variant: layer 2 is one block-diagonal (TM,256)@(256,256) matmul."""
    f32, bf16 = jnp.float32, jnp.bfloat16

    # Cast the f32 embedding tiles to bf16 in-kernel (no separate host cast pass over HBM).
    e = e_ref[...].astype(bf16)
    a = a_ref[...].astype(bf16)

    # Layer 1 (per head): Linear -> ReLU, f32 accumulation.
    h1 = jnp.maximum(jnp.dot(e, w1[...], preferred_element_type=f32) + b1[...], 0.0)
    g1 = jnp.maximum(jnp.dot(a, aw1[...], preferred_element_type=f32) + ab1[...], 0.0)

    # Cast BEFORE concat (halves the (TM,256) intermediate copy), then one 256-wide MXU pass:
    #   [h1 | g1] @ blockdiag(w2, aw2) + [b2 | ab2]  ==  [h1@w2+b2 | g1@aw2+ab2]
    h1c = jnp.concatenate([h1.astype(bf16), g1.astype(bf16)], axis=-1)         # (TM, 256)
    h2 = jnp.maximum(jnp.dot(h1c, w2c[...], preferred_element_type=f32) + b2c[...], 0.0)

    # Merged final layer: [h2 | g2] @ [w3; aw3] + (b3 + ab3)  ==  s + audio_s  (eval=False path).
    out_ref[...] = (jnp.dot(h2.astype(bf16), w3c[...], preferred_element_type=f32)
                    + b3c[...]).astype(out_ref.dtype)                          # (TM, 128) lane-dense


def _heads_kernel_split(e_ref, a_ref, w1, b1, w2, b2, aw1, ab1, aw2, ab2, w3c, b3c, out_ref):
    """v5e (128x128 MXU) variant: per-head 128-wide layer-2 matmuls, cast-before-concat."""
    f32, bf16 = jnp.float32, jnp.bfloat16

    e = e_ref[...].astype(bf16)
    a = a_ref[...].astype(bf16)

    # joints head: Linear -> ReLU -> Linear -> ReLU
    h = jnp.maximum(jnp.dot(e, w1[...], preferred_element_type=f32) + b1[...], 0.0)
    h = jnp.maximum(jnp.dot(h.astype(bf16), w2[...], preferred_element_type=f32) + b2[...], 0.0)

    # audio head: Linear -> ReLU -> Linear -> ReLU
    g = jnp.maximum(jnp.dot(a, aw1[...], preferred_element_type=f32) + ab1[...], 0.0)
    g = jnp.maximum(jnp.dot(g.astype(bf16), aw2[...], preferred_element_type=f32) + ab2[...], 0.0)

    # Cast before concat, then merged final layer (== s + audio_s).
    hc = jnp.concatenate([h.astype(bf16), g.astype(bf16)], axis=-1)            # (TM, 256)
    out_ref[...] = (jnp.dot(hc, w3c[...], preferred_element_type=f32)
                    + b3c[...]).astype(out_ref.dtype)                          # (TM, 128) lane-dense


# ----------------------------------------------------------------------------- tiling / wrapper

def _choose_tm(M, two_cores):
    """Row tile: small M -> one tile rounded to 16 (bf16 sublane packing); otherwise a multiple of
    128 capped at TM_CAP, keeping >= 4 grid steps only on 2-TensorCore chips (>= 2 elsewhere so the
    input/output DMAs still pipeline against compute)."""
    if M < 128:
        return max(16, ((M + 15) // 16) * 16)
    min_steps = 4 if two_cores else 2
    tm = ((pl.cdiv(M, min_steps) + 127) // 128) * 128
    return int(min(TM_CAP, max(128, tm)))


def independent_labeler_logits(e, audio_e, packed_params,
                               *, merge_layer2=MERGE_LAYER2, two_cores=TWO_TENSORCORES):
    """e: [N, S, JOINTS_EMBED_DIM], audio_e: [N, S, AUDIO_EMBED_DIM] -> [N, S, NUM_CLASSES] (f32)."""
    N, S, D = e.shape
    _, _, DA = audio_e.shape
    M = N * S

    # No host-side cast, no host-side row padding: reshape is a free metadata change; the kernel
    # casts each tile to bf16 and the edge tile's OOB rows are computed per-row and never stored.
    e2 = e.reshape(M, D)
    a2 = audio_e.reshape(M, DA)

    TM = _choose_tm(M, two_cores)
    grid = (pl.cdiv(M, TM),)

    kernel = _heads_kernel_merged if merge_layer2 else _heads_kernel_split

    def resident(x):
        # Full-array block + constant index_map: stays resident in VMEM across grid steps.
        return pl.BlockSpec(x.shape, lambda i: (0, 0))

    weight_specs = [resident(p) for p in packed_params]

    out = pl.pallas_call(
        kernel,
        # bf16, 128-lane-padded output: lane-dense stores, half the f32 write amplification.
        out_shape=jax.ShapeDtypeStruct((M, OUT_PAD), jnp.bfloat16),
        grid_spec=pltpu.PrefetchScalarGridSpec(
            num_scalar_prefetch=0,
            grid=grid,
            in_specs=[
                pl.BlockSpec((TM, D), lambda i: (i, 0)),
                pl.BlockSpec((TM, DA), lambda i: (i, 0)),
            ] + weight_specs,
            out_specs=pl.BlockSpec((TM, OUT_PAD), lambda i: (i, 0)),
        ),
        compiler_params=pltpu.CompilerParams(
            dimension_semantics=("parallel",),
            vmem_limit_bytes=VMEM_LIMIT_BYTES),
    )(e2, a2, *packed_params)

    # Padded lanes 4..127 are zero (w3c/b3c zero-padded); slice + cast back to f32 for callers.
    return out[:, :NUM_CLASSES].astype(jnp.float32).reshape(N, S, NUM_CLASSES)


# ----------------------------------------------------------------------------- params

def init_params(key):
    """Deterministic init mirroring nn.init.normal_(w, 0, sqrt(2/hidden_size)); biases zeroed. f32."""
    std = math.sqrt(2.0 / HIDDEN)
    ks = jax.random.split(key, 6)
    w1 = std * jax.random.normal(ks[0], (JOINTS_EMBED_DIM, HIDDEN), jnp.float32)
    w2 = std * jax.random.normal(ks[1], (HIDDEN, HIDDEN), jnp.float32)
    w3 = std * jax.random.normal(ks[2], (HIDDEN, NUM_CLASSES), jnp.float32)
    aw1 = std * jax.random.normal(ks[3], (AUDIO_EMBED_DIM, HIDDEN), jnp.float32)
    aw2 = std * jax.random.normal(ks[4], (HIDDEN, HIDDEN), jnp.float32)
    aw3 = std * jax.random.normal(ks[5], (HIDDEN, NUM_CLASSES), jnp.float32)
    b1 = jnp.zeros((1, HIDDEN), jnp.float32)
    b2 = jnp.zeros((1, HIDDEN), jnp.float32)
    b3 = jnp.zeros((1, NUM_CLASSES), jnp.float32)
    ab1 = jnp.zeros((1, HIDDEN), jnp.float32)
    ab2 = jnp.zeros((1, HIDDEN), jnp.float32)
    ab3 = jnp.zeros((1, NUM_CLASSES), jnp.float32)
    return (w1, b1, w2, b2, w3, b3, aw1, ab1, aw2, ab2, aw3, ab3)


def pack_params(params, merge_layer2=MERGE_LAYER2):
    """One-time conversion to kernel layout: bf16 weights, f32 biases, merged/padded final layer,
    and (on 256-wide-MXU chips) a block-diagonal layer-2 weight."""
    (w1, b1, w2, b2, w3, b3, aw1, ab1, aw2, ab2, aw3, ab3) = params
    bf = jnp.bfloat16
    w3c = jnp.concatenate([w3, aw3], axis=0)                        # (256, 4)
    w3c = jnp.pad(w3c, ((0, 0), (0, OUT_PAD - NUM_CLASSES)))        # (256, 128) zero-padded lanes
    b3c = jnp.pad(b3 + ab3, ((0, 0), (0, OUT_PAD - NUM_CLASSES)))   # (1, 128)
    if merge_layer2:
        w2c = jnp.zeros((2 * HIDDEN, 2 * HIDDEN), jnp.float32)      # blockdiag(w2, aw2): (256, 256)
        w2c = w2c.at[:HIDDEN, :HIDDEN].set(w2)
        w2c = w2c.at[HIDDEN:, HIDDEN:].set(aw2)
        b2c = jnp.concatenate([b2, ab2], axis=-1)                   # (1, 256)
        return (w1.astype(bf), b1, aw1.astype(bf), ab1,
                w2c.astype(bf), b2c, w3c.astype(bf), b3c)
    return (w1.astype(bf), b1, w2.astype(bf), b2,
            aw1.astype(bf), ab1, aw2.astype(bf), ab2,
            w3c.astype(bf), b3c)


# ----------------------------------------------------------------------------- reference / test

def reference_logits(e, audio_e, params):
    """Pure-JAX reference mirroring the kernel math (bf16 operands, f32 accumulation)."""
    (w1, b1, w2, b2, w3, b3, aw1, ab1, aw2, ab2, aw3, ab3) = params
    bf, f32 = jnp.bfloat16, jnp.float32

    def lin(x, w, b):
        return jnp.dot(x.astype(bf), w.astype(bf), preferred_element_type=f32) + b

    N, S, D = e.shape
    e2 = e.reshape(N * S, D)
    a2 = audio_e.reshape(N * S, -1)
    h = jax.nn.relu(lin(e2, w1, b1))
    h = jax.nn.relu(lin(h, w2, b2))
    s = lin(h, w3, b3)
    g = jax.nn.relu(lin(a2, aw1, ab1))
    g = jax.nn.relu(lin(g, aw2, ab2))
    sa = lin(g, aw3, ab3)
    return (s + sa).reshape(N, S, NUM_CLASSES)


if __name__ == "__main__":
    key = jax.random.PRNGKey(0)
    k_e, k_a, k_p = jax.random.split(key, 3)

    # Small shapes: batch N=2, sequence length S=8 (embeddings the gcns/audio pipeline would produce).
    N, S = 2, 8
    e = jax.random.normal(k_e, (N, S, JOINTS_EMBED_DIM), jnp.float32)
    audio_e = jax.random.normal(k_a, (N, S, AUDIO_EMBED_DIM), jnp.float32)
    params = init_params(k_p)
    packed = pack_params(params)

    out = independent_labeler_logits(e, audio_e, packed)
    out = jax.block_until_ready(out)

    ref = reference_logits(e, audio_e, params)
    assert out.shape == (N, S, NUM_CLASSES)
    assert jnp.allclose(out, ref, atol=2e-2, rtol=2e-2), float(jnp.max(jnp.abs(out - ref)))

    print("KERNEL_OK")
</pallas_src>

<mosaic_0001>
module attributes {stable_mosaic.version = 11 : i64} {
  func.func @_heads_kernel_split(%arg0: i32, %arg1: memref<16x256xf32, #tpu.memory_space<vmem>>, %arg2: memref<16x512xf32, #tpu.memory_space<vmem>>, %arg3: memref<256x128xbf16, #tpu.memory_space<vmem>>, %arg4: memref<1x128xf32, #tpu.memory_space<vmem>>, %arg5: memref<128x128xbf16, #tpu.memory_space<vmem>>, %arg6: memref<1x128xf32, #tpu.memory_space<vmem>>, %arg7: memref<512x128xbf16, #tpu.memory_space<vmem>>, %arg8: memref<1x128xf32, #tpu.memory_space<vmem>>, %arg9: memref<128x128xbf16, #tpu.memory_space<vmem>>, %arg10: memref<1x128xf32, #tpu.memory_space<vmem>>, %arg11: memref<256x128xbf16, #tpu.memory_space<vmem>>, %arg12: memref<1x128xf32, #tpu.memory_space<vmem>>, %arg13: memref<16x128xbf16, #tpu.memory_space<vmem>>) attributes {dimension_semantics = [#tpu.dimension_semantics<parallel>], iteration_bounds = array<i64: 1>, scalar_prefetch = 0 : i64, scratch_operands = 0 : i64, tpu.core_type = #tpu.core_type<tc>, window_params = [{transform_indices = @transform_0, window_bounds = array<i64: 16, 256>}, {transform_indices = @transform_1, window_bounds = array<i64: 16, 512>}, {pipeline_mode = #tpu.pipeline_mode<synchronous>, transform_indices = @transform_2, window_bounds = array<i64: 256, 128>}, {pipeline_mode = #tpu.pipeline_mode<synchronous>, transform_indices = @transform_3, window_bounds = array<i64: 1, 128>}, {pipeline_mode = #tpu.pipeline_mode<synchronous>, transform_indices = @transform_4, window_bounds = array<i64: 128, 128>}, {pipeline_mode = #tpu.pipeline_mode<synchronous>, transform_indices = @transform_5, window_bounds = array<i64: 1, 128>}, {pipeline_mode = #tpu.pipeline_mode<synchronous>, transform_indices = @transform_6, window_bounds = array<i64: 512, 128>}, {pipeline_mode = #tpu.pipeline_mode<synchronous>, transform_indices = @transform_7, window_bounds = array<i64: 1, 128>}, {pipeline_mode = #tpu.pipeline_mode<synchronous>, transform_indices = @transform_8, window_bounds = array<i64: 128, 128>}, {pipeline_mode = #tpu.pipeline_mode<synchronous>, transform_indices = @transform_9, window_bounds = array<i64: 1, 128>}, {pipeline_mode = #tpu.pipeline_mode<synchronous>, transform_indices = @transform_10, window_bounds = array<i64: 256, 128>}, {pipeline_mode = #tpu.pipeline_mode<synchronous>, transform_indices = @transform_11, window_bounds = array<i64: 1, 128>}, {transform_indices = @transform_12, window_bounds = array<i64: 16, 128>}]} {
    %c0 = arith.constant 0 : index
    %c0_0 = arith.constant 0 : index
    %0 = vector.load %arg1[%c0, %c0_0] : memref<16x256xf32, #tpu.memory_space<vmem>>, vector<16x256xf32>
    %1 = arith.truncf %0 : vector<16x256xf32> to vector<16x256xbf16>
    %c0_1 = arith.constant 0 : index
    %c0_2 = arith.constant 0 : index
    %2 = vector.load %arg2[%c0_1, %c0_2] : memref<16x512xf32, #tpu.memory_space<vmem>>, vector<16x512xf32>
    %3 = arith.truncf %2 : vector<16x512xf32> to vector<16x512xbf16>
    %c0_3 = arith.constant 0 : index
    %c0_4 = arith.constant 0 : index
    %4 = vector.load %arg3[%c0_3, %c0_4] : memref<256x128xbf16, #tpu.memory_space<vmem>>, vector<256x128xbf16>
    %cst = arith.constant dense<0.000000e+00> : vector<16x128xf32>
    %5 = tpu.matmul %1, %4, %cst {dimension_numbers = #tpu.dot_dimension_numbers<[1], [0], [0], [1], [0, 0, 1, 1], [], []>} : vector<16x256xbf16>, vector<256x128xbf16>, vector<16x128xf32> -> vector<16x128xf32>
    %c0_5 = arith.constant 0 : index
    %c0_6 = arith.constant 0 : index
    %6 = vector.load %arg4[%c0_5, %c0_6] : memref<1x128xf32, #tpu.memory_space<vmem>>, vector<1x128xf32>
    %7 = vector.broadcast %6 : vector<1x128xf32> to vector<16x128xf32>
    %8 = arith.addf %5, %7 : vector<16x128xf32>
    %cst_7 = arith.constant 0.000000e+00 : f32
    %9 = vector.broadcast %cst_7 : f32 to vector<16x128xf32>
    %10 = arith.maximumf %8, %9 : vector<16x128xf32>
    %11 = arith.truncf %10 : vector<16x128xf32> to vector<16x128xbf16>
    %c0_8 = arith.constant 0 : index
    %c0_9 = arith.constant 0 : index
    %12 = vector.load %arg5[%c0_8, %c0_9] : memref<128x128xbf16, #tpu.memory_space<vmem>>, vector<128x128xbf16>
    %cst_10 = arith.constant dense<0.000000e+00> : vector<16x128xf32>
    %13 = tpu.matmul %11, %12, %cst_10 {dimension_numbers = #tpu.dot_dimension_numbers<[1], [0], [0], [1], [0, 0, 1, 1], [], []>} : vector<16x128xbf16>, vector<128x128xbf16>, vector<16x128xf32> -> vector<16x128xf32>
    %c0_11 = arith.constant 0 : index
    %c0_12 = arith.constant 0 : index
    %14 = vector.load %arg6[%c0_11, %c0_12] : memref<1x128xf32, #tpu.memory_space<vmem>>, vector<1x128xf32>
    %15 = vector.broadcast %14 : vector<1x128xf32> to vector<16x128xf32>
    %16 = arith.addf %13, %15 : vector<16x128xf32>
    %cst_13 = arith.constant 0.000000e+00 : f32
    %17 = vector.broadcast %cst_13 : f32 to vector<16x128xf32>
    %18 = arith.maximumf %16, %17 : vector<16x128xf32>
    %c0_14 = arith.constant 0 : index
    %c0_15 = arith.constant 0 : index
    %19 = vector.load %arg7[%c0_14, %c0_15] : memref<512x128xbf16, #tpu.memory_space<vmem>>, vector<512x128xbf16>
    %cst_16 = arith.constant dense<0.000000e+00> : vector<16x128xf32>
    %20 = tpu.matmul %3, %19, %cst_16 {dimension_numbers = #tpu.dot_dimension_numbers<[1], [0], [0], [1], [0, 0, 1, 1], [], []>} : vector<16x512xbf16>, vector<512x128xbf16>, vector<16x128xf32> -> vector<16x128xf32>
    %c0_17 = arith.constant 0 : index
    %c0_18 = arith.constant 0 : index
    %21 = vector.load %arg8[%c0_17, %c0_18] : memref<1x128xf32, #tpu.memory_space<vmem>>, vector<1x128xf32>
    %22 = vector.broadcast %21 : vector<1x128xf32> to vector<16x128xf32>
    %23 = arith.addf %20, %22 : vector<16x128xf32>
    %cst_19 = arith.constant 0.000000e+00 : f32
    %24 = vector.broadcast %cst_19 : f32 to vector<16x128xf32>
    %25 = arith.maximumf %23, %24 : vector<16x128xf32>
    %26 = arith.truncf %25 : vector<16x128xf32> to vector<16x128xbf16>
    %c0_20 = arith.constant 0 : index
    %c0_21 = arith.constant 0 : index
    %27 = vector.load %arg9[%c0_20, %c0_21] : memref<128x128xbf16, #tpu.memory_space<vmem>>, vector<128x128xbf16>
    %cst_22 = arith.constant dense<0.000000e+00> : vector<16x128xf32>
    %28 = tpu.matmul %26, %27, %cst_22 {dimension_numbers = #tpu.dot_dimension_numbers<[1], [0], [0], [1], [0, 0, 1, 1], [], []>} : vector<16x128xbf16>, vector<128x128xbf16>, vector<16x128xf32> -> vector<16x128xf32>
    %c0_23 = arith.constant 0 : index
    %c0_24 = arith.constant 0 : index
    %29 = vector.load %arg10[%c0_23, %c0_24] : memref<1x128xf32, #tpu.memory_space<vmem>>, vector<1x128xf32>
    %30 = vector.broadcast %29 : vector<1x128xf32> to vector<16x128xf32>
    %31 = arith.addf %28, %30 : vector<16x128xf32>
    %cst_25 = arith.constant 0.000000e+00 : f32
    %32 = vector.broadcast %cst_25 : f32 to vector<16x128xf32>
    %33 = arith.maximumf %31, %32 : vector<16x128xf32>
    %34 = arith.truncf %18 : vector<16x128xf32> to vector<16x128xbf16>
    %35 = arith.truncf %33 : vector<16x128xf32> to vector<16x128xbf16>
    %36 = tpu.concatenate %34, %35 in 1 : vector<16x128xbf16>, vector<16x128xbf16> -> vector<16x256xbf16>
    %c0_26 = arith.constant 0 : index
    %c0_27 = arith.constant 0 : index
    %37 = vector.load %arg11[%c0_26, %c0_27] : memref<256x128xbf16, #tpu.memory_space<vmem>>, vector<256x128xbf16>
    %cst_28 = arith.constant dense<0.000000e+00> : vector<16x128xf32>
    %38 = tpu.matmul %36, %37, %cst_28 {dimension_numbers = #tpu.dot_dimension_numbers<[1], [0], [0], [1], [0, 0, 1, 1], [], []>} : vector<16x256xbf16>, vector<256x128xbf16>, vector<16x128xf32> -> vector<16x128xf32>
    %c0_29 = arith.constant 0 : index
    %c0_30 = arith.constant 0 : index
    %39 = vector.load %arg12[%c0_29, %c0_30] : memref<1x128xf32, #tpu.memory_space<vmem>>, vector<1x128xf32>
    %40 = vector.broadcast %39 : vector<1x128xf32> to vector<16x128xf32>
    %41 = arith.addf %38, %40 : vector<16x128xf32>
    %42 = arith.truncf %41 : vector<16x128xf32> to vector<16x128xbf16>
    %c0_31 = arith.constant 0 : index
    %c0_32 = arith.constant 0 : index
    %43 = vector.load %arg13[%c0_31, %c0_32] : memref<16x128xbf16, #tpu.memory_space<vmem>>, vector<16x128xbf16>
    tpu.vector_store %arg13[%c0_31, %c0_32], %42 {strides = array<i32>} : memref<16x128xbf16, #tpu.memory_space<vmem>>, vector<16x128xbf16>,
    return
  }
  func.func @transform_0(%arg0: i32) -> (i32, i32) {
    %c0_i32 = arith.constant 0 : i32
    %c0_i32_0 = arith.constant 0 : i32
    return %arg0, %c0_i32 : i32, i32
  }
  func.func @transform_1(%arg0: i32) -> (i32, i32) {
    %c0_i32 = arith.constant 0 : i32
    %c0_i32_0 = arith.constant 0 : i32
    return %arg0, %c0_i32 : i32, i32
  }
  func.func @transform_2(%arg0: i32) -> (i32, i32) {
    %c0_i32 = arith.constant 0 : i32
    %c0_i32_0 = arith.constant 0 : i32
    %c0_i32_1 = arith.constant 0 : i32
    return %c0_i32, %c0_i32_0 : i32, i32
  }
  func.func @transform_3(%arg0: i32) -> (i32, i32) {
    %c0_i32 = arith.constant 0 : i32
    %c0_i32_0 = arith.constant 0 : i32
    %c0_i32_1 = arith.constant 0 : i32
    return %c0_i32, %c0_i32_0 : i32, i32
  }
  func.func @transform_4(%arg0: i32) -> (i32, i32) {
    %c0_i32 = arith.constant 0 : i32
    %c0_i32_0 = arith.constant 0 : i32
    %c0_i32_1 = arith.constant 0 : i32
    return %c0_i32, %c0_i32_0 : i32, i32
  }
  func.func @transform_5(%arg0: i32) -> (i32, i32) {
    %c0_i32 = arith.constant 0 : i32
    %c0_i32_0 = arith.constant 0 : i32
    %c0_i32_1 = arith.constant 0 : i32
    return %c0_i32, %c0_i32_0 : i32, i32
  }
  func.func @transform_6(%arg0: i32) -> (i32, i32) {
    %c0_i32 = arith.constant 0 : i32
    %c0_i32_0 = arith.constant 0 : i32
    %c0_i32_1 = arith.constant 0 : i32
    return %c0_i32, %c0_i32_0 : i32, i32
  }
  func.func @transform_7(%arg0: i32) -> (i32, i32) {
    %c0_i32 = arith.constant 0 : i32
    %c0_i32_0 = arith.constant 0 : i32
    %c0_i32_1 = arith.constant 0 : i32
    return %c0_i32, %c0_i32_0 : i32, i32
  }
  func.func @transform_8(%arg0: i32) -> (i32, i32) {
    %c0_i32 = arith.constant 0 : i32
    %c0_i32_0 = arith.constant 0 : i32
    %c0_i32_1 = arith.constant 0 : i32
    return %c0_i32, %c0_i32_0 : i32, i32
  }
  func.func @transform_9(%arg0: i32) -> (i32, i32) {
    %c0_i32 = arith.constant 0 : i32
    %c0_i32_0 = arith.constant 0 : i32
    %c0_i32_1 = arith.constant 0 : i32
    return %c0_i32, %c0_i32_0 : i32, i32
  }
  func.func @transform_10(%arg0: i32) -> (i32, i32) {
    %c0_i32 = arith.constant 0 : i32
    %c0_i32_0 = arith.constant 0 : i32
    %c0_i32_1 = arith.constant 0 : i32
    return %c0_i32, %c0_i32_0 : i32, i32
  }
  func.func @transform_11(%arg0: i32) -> (i32, i32) {
    %c0_i32 = arith.constant 0 : i32
    %c0_i32_0 = arith.constant 0 : i32
    %c0_i32_1 = arith.constant 0 : i32
    return %c0_i32, %c0_i32_0 : i32, i32
  }
  func.func @transform_12(%arg0: i32) -> (i32, i32) {
    %c0_i32 = arith.constant 0 : i32
    %c0_i32_0 = arith.constant 0 : i32
    return %arg0, %c0_i32 : i32, i32
  }
}

</mosaic_0001>

<bundles_post_ra>
// kernel: tpu_custom_call.1
= control target key start
LH: loop header
LB: loop body
LE: loop exit
PB: predicated region body
PF: predicated region fallthrough
CT: control target
= control target key end

     0   :  { %17 = vsyncpa [#allocation3], 0  ;;  %s1783_s0 = inlined_call_operand.hbm [shape: f32[16,256], index: 0, kind: input, shape index: {}]   ;;  %s1784_s1 = inlined_call_operand.hbm [shape: f32[16,512], index: 1, kind: input, shape index: {}]   ;;  %s1785_s2 = inlined_call_operand.hbm [shape: bf16[256,128], index: 2, kind: input, shape index: {}]   ;;  %s1786_s3 = inlined_call_operand.vmem [shape: f32[1,128], index: 3, kind: input, shape index: {}]   ;;  %s1787_s4 = inlined_call_operand.hbm [shape: bf16[128,128], index: 4, kind: input, shape index: {}]   ;;  %s1788_s5 = inlined_call_operand.vmem [shape: f32[1,128], index: 5, kind: input, shape index: {}]   ;;  %s1789_s6 = inlined_call_operand.hbm [shape: bf16[512,128], index: 6, kind: input, shape index: {}]   ;;  %s1790_s7 = inlined_call_operand.vmem [shape: f32[1,128], index: 7, kind: input, shape index: {}]   ;;  %s1791_s8 = inlined_call_operand.hbm [shape: bf16[128,128], index: 8, kind: input, shape index: {}]   ;;  %s1792_s9 = inlined_call_operand.vmem [shape: f32[1,128], index: 9, kind: input, shape index: {}]   ;;  %s1793_s10 = inlined_call_operand.hbm [shape: bf16[256,128], index: 10, kind: input, shape index: {}]   ;;  %s1794_s11 = inlined_call_operand.vmem [shape: f32[1,128], index: 11, kind: input, shape index: {}]   ;;  %s1795_s12 = inlined_call_operand.hbm [shape: bf16[16,128], index: 12, kind: output, shape index: {}]  }
   0x1   :  { %18 = vsyncpa [#allocation6], 0 }
   0x2   :  { %19 = vsyncpa [#allocation9], 0 }
   0x3   :  { %20 = vsyncpa [#allocation12], 0 }
   0x4   :  { %21 = vsyncpa [#allocation4], 0  ;;  %s1625_s21 = smov [#allocation5]  }
   0x5   :  { %s39_s22 = sshll.u32 %s1625_s21, 4  ;;  %s40_s22 = int_to_ptr.vmem [resolvable:$true] %s39_s22 }
   0x6   :  { %s1463_s23 = scalar_lea.vmem %s40_s22, 1024  ;;  %p1468_p1 = scmp.lt.s32.totalorder %s40_s22, %s40_s22 }
   0x7   :  { %p1464_p0 = scmp.ne.s32.totalorder %s40_s22, %s1463_s23  ;;  %p1469_p2 = scmp.lt.s32.totalorder %s1463_s23, %s1463_s23 }
   0x9   :  { %p1470_p3 = por %p1469_p2, %p1468_p1 }
   0xb   :  { %p1471_p4 = pnand %p1470_p3, %p1464_p0 }
   0xd   :  { %1474 = shalt.err (!%p1471_p4)
}
   0xe   :  { %s1626_s24 = smov 512   ;;  %s1627_s25 = smov 32  }
   0xf   :  { %45 = dma.hbm_to_vmem [thread:$0]  %s1784_s1, 1024, %s40_s22, [#allocation6], %s1626_s24, %s1626_s24, %s1627_s25  }
  0x10   :  { %s1628_s28 = smov [#allocation8]   ;;  %s1629_s30 = smov [#allocation11]  }
  0x11   :  { %s65_s29 = sshll.u32 %s1628_s28, 4  ;;  %s93_s13 = sshll.u32 %s1629_s30, 4  ;;  %s66_s29 = int_to_ptr.vmem [resolvable:$true] %s65_s29  ;;  %s94_s13 = int_to_ptr.vmem [resolvable:$true] %s93_s13 }
  0x12   :  { %s1483_s14 = scalar_lea.vmem %s66_s29, 1024  ;;  %p1488_p6 = scmp.lt.s32.totalorder %s66_s29, %s66_s29 }
  0x13   :  { %p1484_p5 = scmp.ne.s32.totalorder %s66_s29, %s1483_s14  ;;  %p1489_p7 = scmp.lt.s32.totalorder %s1483_s14, %s1483_s14 }
  0x15   :  { %p1490_p8 = por %p1489_p7, %p1488_p6 }
  0x17   :  { %p1491_p9 = pnand %p1490_p8, %p1484_p5 }
  0x19   :  { %1494 = shalt.err (!%p1491_p9)
}
  0x1a   :  { %s1630_s15 = smov 64   ;;  %s1631_s16 = smov 4  }
  0x1b   :  { %71 = dma.hbm_to_vmem [thread:$0]  %s1787_s4, 1024, %s66_s29, [#allocation9], %s1630_s15, %s1630_s15, %s1631_s16  }
  0x1c   :  { %s1503_s1 = scalar_lea.vmem %s94_s13, 1024  ;;  %p1508_p11 = scmp.lt.s32.totalorder %s94_s13, %s94_s13 }
  0x1d   :  { %p1504_p10 = scmp.ne.s32.totalorder %s94_s13, %s1503_s1  ;;  %p1509_p12 = scmp.lt.s32.totalorder %s1503_s1, %s1503_s1 }
  0x1f   :  { %p1510_p13 = por %p1509_p12, %p1508_p11 }
  0x21   :  { %p1511_p0 = pnand %p1510_p13, %p1504_p10 }
  0x23   :  { %1514 = shalt.err (!%p1511_p0)
}
  0x24   :  { %99 = dma.hbm_to_vmem [thread:$0]  %s1791_s8, 1024, %s94_s13, [#allocation12], %s1630_s15, %s1630_s15, %s1631_s16  }
  0x25   :  { %s1632_s21 = smov [#allocation2]  }
  0x26   :  { %s27_s22 = sshll.u32 %s1632_s21, 4  ;;  %s28_s22 = int_to_ptr.vmem [resolvable:$true] %s27_s22 }
  0x27   :  { %s1523_s23 = scalar_lea.vmem %s28_s22, 512  ;;  %p1528_p2 = scmp.lt.s32.totalorder %s28_s22, %s28_s22 }
  0x28   :  { %p1524_p1 = scmp.ne.s32.totalorder %s28_s22, %s1523_s23  ;;  %p1529_p3 = scmp.lt.s32.totalorder %s1523_s23, %s1523_s23 }
  0x2a   :  { %p1530_p4 = por %p1529_p3, %p1528_p2 }
  0x2c   :  { %p1531_p5 = pnand %p1530_p4, %p1524_p1 }
  0x2e   :  { %1534 = shalt.err (!%p1531_p5)
}
  0x2f   :  { %s1633_s4 = smov 256   ;;  %s1634_s24 = smov 16  }
  0x30   :  { %33 = dma.hbm_to_vmem [thread:$0]  %s1783_s0, 512, %s28_s22, [#allocation3], %s1633_s4, %s1633_s4, %s1634_s24  }
  0x31   :  { %s1635_s27 = smov [#allocation7]   ;;  %s1636_s29 = smov [#allocation10]  }
  0x32   :  { %s51_s28 = sshll.u32 %s1635_s27, 4  ;;  %s79_s8 = sshll.u32 %s1636_s29, 4  ;;  %s52_s28 = int_to_ptr.vmem [resolvable:$true] %s51_s28  ;;  %s80_s8 = int_to_ptr.vmem [resolvable:$true] %s79_s8 }
  0x33   :  { %s1543_s30 = scalar_lea.vmem %s52_s28, 2048  ;;  %p1548_p7 = scmp.lt.s32.totalorder %s52_s28, %s52_s28 }
  0x34   :  { %p1544_p6 = scmp.ne.s32.totalorder %s52_s28, %s1543_s30  ;;  %p1549_p8 = scmp.lt.s32.totalorder %s1543_s30, %s1543_s30 }
  0x36   :  { %p1550_p9 = por %p1549_p8, %p1548_p7 }
  0x38   :  { %p1551_p10 = pnand %p1550_p9, %p1544_p6 }
  0x3a   :  { %1554 = shalt.err (!%p1551_p10)
}
  0x3b   :  { %57 = dma.hbm_to_vmem [thread:$0]  %s1785_s2, 2048, %s52_s28, [#allocation6], %s1630_s15, %s1630_s15, %s1631_s16  }
  0x3c   :  { %s1563_s0 = scalar_lea.vmem %s80_s8, 4096  ;;  %p1568_p12 = scmp.lt.s32.totalorder %s80_s8, %s80_s8 }
  0x3d   :  { %p1564_p11 = scmp.ne.s32.totalorder %s80_s8, %s1563_s0  ;;  %p1569_p13 = scmp.lt.s32.totalorder %s1563_s0, %s1563_s0 }
  0x3f   :  { %p1570_p0 = por %p1569_p13, %p1568_p12 }
  0x41   :  { %p1571_p1 = pnand %p1570_p0, %p1564_p11 }
  0x43   :  { %1574 = shalt.err (!%p1571_p1)
}
  0x44   :  { %85 = dma.hbm_to_vmem [thread:$0]  %s1789_s6, 4096, %s80_s8, [#allocation9], %s1630_s15, %s1630_s15, %s1631_s16  }
  0x45   :  { %s1637_s1 = smov [#allocation13]  }
  0x46   :  { %s107_s19 = sshll.u32 %s1637_s1, 4  ;;  %s108_s19 = int_to_ptr.vmem [resolvable:$true] %s107_s19 }
  0x47   :  { %s1583_s20 = scalar_lea.vmem %s108_s19, 2048  ;;  %p1588_p3 = scmp.lt.s32.totalorder %s108_s19, %s108_s19 }
  0x48   :  { %p1584_p2 = scmp.ne.s32.totalorder %s108_s19, %s1583_s20  ;;  %p1589_p4 = scmp.lt.s32.totalorder %s1583_s20, %s1583_s20 }
  0x4a   :  { %p1590_p5 = por %p1589_p4, %p1588_p3 }
  0x4c   :  { %p1591_p6 = pnand %p1590_p5, %p1584_p2 }
  0x4e   :  { %1594 = shalt.err (!%p1591_p6)
}
  0x4f   :  { %113 = dma.hbm_to_vmem [thread:$0]  %s1793_s10, 2048, %s108_s19, [#allocation12], %s1630_s15, %s1630_s15, %s1631_s16  }
  0x50   :  { %1615 = dma.done.wait [#allocation3], 512  }
  0x51   :  { %1616 = vsyncadd [#allocation3], 4294966784 }
  0x52   :  { %1617 = dma.done.wait [#allocation6], 3072  }
  0x53   :  { %1618 = vsyncadd [#allocation6], 4294964224 }
  0x54   :  { %1619 = dma.done.wait [#allocation9], 5120  }
  0x55   :  { %1620 = vsyncadd [#allocation9], 4294962176 }
  0x56   :  { %1621 = dma.done.wait [#allocation12], 3072  }
  0x57   :  { %1622 = vsyncadd [#allocation12], 4294964224  ;;  %v1638_v0 = vmov 0.0   ;;  %v1375_v1 = vld [vmem:[#allocation7 + $0x78] sm:$0xff]   ;;  %v1377_v3 = vld [vmem:[#allocation7 + $0x70] sm:$0xff]   ;;  %vm1639_vm0 = vmmov 0  }
  0x58   :  { %1319 = vmatprep.subr.bf16.mxu1 %v1638_v0  ;;  %v1376_v2 = vld [vmem:[#allocation7 + $0x38] sm:$0xff]   ;;  %1213 = vmatprep.subr.bf16.mxu0 %v1375_v1  ;;  %v1378_v4 = vld [vmem:[#allocation7 + $0x30] sm:$0xff]   ;;  %v1379_v5 = vld [vmem:[#allocation7 + $0x68] sm:$0xff]  }
  0x59   :  { %1214 = vmatpush3.bf16.msra.mxu0 %v1376_v2  ;;  %v1380_v6 = vld [vmem:[#allocation7 + $0x28] sm:$0xff]   ;;  %v1381_v7 = vld [vmem:[#allocation7 + $0x60] sm:$0xff]   ;;  %v1383_v9 = vld [vmem:[#allocation7 + $0x58] sm:$0xff]   ;;  %1335 = vmatprep.mubr.msk.bf16.mxu1 %vm1639_vm0, %v1638_v0 }
  0x5a   :  { %1215 = vmatprep.subr.bf16.mxu0 %v1377_v3  ;;  %v1382_v8 = vld [vmem:[#allocation7 + $0x20] sm:$0xff]   ;;  %v1384_v10 = vld [vmem:[#allocation7 + $0x18] sm:$0xff]   ;;  %v1385_v11 = vld [vmem:[#allocation7 + $0x50] sm:$0xff]  }
  0x5b   :  { %v139_v12 = vld [vmem:[#allocation2 + $0x8] sm:$0xff]  ;;  %v141_v13 = vld [vmem:[#allocation2 + $0x18] sm:$0xff]  ;;  %v1386_v14 = vld [vmem:[#allocation7 + $0x10] sm:$0xff]  }
  0x5c   :  { %v143_v15 = vpack.c.bf16 %v141_v13, %v139_v12  ;;  %v1391_v16 = vld [vmem:[#allocation8 + $0x38] sm:$0xff]   ;;  %v1387_v17 = vld [vmem:[#allocation7 + $0x48] sm:$0xff]   ;;  %v1392_v18 = vld [vmem:[#allocation8 + $0x30] sm:$0xff]  }
  0x5d   :  { %1216 = vmatpush3.bf16.msra.mxu0 %v1378_v4  ;;  %1320 = vmatpush3.bf16.msra.mxu1 %v1391_v16  ;;  %v1388_v19 = vld [vmem:[#allocation7 + $0x8] sm:$0xff]   ;;  %v1389_v20 = vld [vmem:[#allocation7 + $0x40] sm:$0xff]   ;;  %v140_v24 = vld [vmem:[#allocation2 + $0x10] sm:$0xff] }
  0x5e   :  { %1217 = vmatprep.subr.bf16.mxu0 %v1379_v5  ;;  %323 = vmatprep.mubr.bf16.mxu0 %v143_v15  ;;  %v1393_v21 = vld [vmem:[#allocation8 + $0x28] sm:$0xff]   ;;  %v1390_v22 = vld [vmem:[#allocation7] sm:$0xff]   ;;  %v1395_v27 = vld [vmem:[#allocation8 + $0x18] sm:$0xff]  }
  0x5f   :  { %1321 = vmatprep.subr.bf16.mxu1 %v1638_v0  ;;  %v138_v23 = vld [vmem:[#allocation2] sm:$0xff]  ;;  %v1396_v28 = vld [vmem:[#allocation8 + $0x10] sm:$0xff]   ;;  %v1397_v29 = vld [vmem:[#allocation10 + $0x78] sm:$0xff]  }
  0x60   :  { %v1394_v25 = vld [vmem:[#allocation8 + $0x20] sm:$0xff]   ;;  %v142_v26 = vpack.c.bf16 %v140_v24, %v138_v23  ;;  %v1398_v30 = vld [vmem:[#allocation8 + $0x8] sm:$0xff]   ;;  %v1399_v31 = vld [vmem:[#allocation10 + $0x38] sm:$0xff]  }
  0x61   :  { %1218 = vmatpush3.bf16.msra.mxu0 %v1380_v6  ;;  %1322 = vmatpush3.bf16.msra.mxu1 %v1392_v18  ;;  %v1400_v32 = vld [vmem:[#allocation10 + $0x70] sm:$0xff]   ;;  %v1401_v33 = vld [vmem:[#allocation8] sm:$0xff]   ;;  %v1403_v35 = vld [vmem:[#allocation10 + $0x68] sm:$0xff]  }
  0x62   :  { %1219 = vmatprep.subr.bf16.mxu0 %v1381_v7  ;;  %1323 = vmatprep.subr.bf16.mxu1 %v1638_v0  ;;  %v1402_v34 = vld [vmem:[#allocation10 + $0x30] sm:$0xff]   ;;  %v1404_v36 = vld [vmem:[#allocation10 + $0xf8] sm:$0xff]   ;;  %v1405_v37 = vld [vmem:[#allocation10 + $0x28] sm:$0xff]  }
  0x63   :  { %v1407_v38 = vld [vmem:[#allocation10 + $0x60] sm:$0xff]   ;;  %v1411_v40 = vld [vmem:[#allocation10 + $0x58] sm:$0xff]   ;;  %v1415_v42 = vld [vmem:[#allocation10 + $0x50] sm:$0xff]  }
  0x64   :  { %v1409_v39 = vld [vmem:[#allocation10 + $0x20] sm:$0xff]   ;;  %v1413_v41 = vld [vmem:[#allocation10 + $0x18] sm:$0xff]   ;;  %v1417_v43 = vld [vmem:[#allocation10 + $0x10] sm:$0xff]  }
  0x65   :  { %1220 = vmatpush3.bf16.msra.mxu0 %v1382_v8  ;;  %1324 = vmatpush3.bf16.msra.mxu1 %v1393_v21  ;;  %v1419_v44 = vld [vmem:[#allocation10 + $0x48] sm:$0xff]   ;;  %v1423_v46 = vld [vmem:[#allocation10 + $0x40] sm:$0xff]   ;;  %v147_v63 = vld [vmem:[#allocation5 + $0x18] sm:$0xff] }
  0x66   :  { %1221 = vmatprep.subr.bf16.mxu0 %v1383_v9  ;;  %1325 = vmatprep.subr.bf16.mxu1 %v1638_v0  ;;  %v1421_v45 = vld [vmem:[#allocation10 + $0x8] sm:$0xff]   ;;  %v1425_v47 = vld [vmem:[#allocation10] sm:$0xff]   ;;  %v151_v1 = vld [vmem:[#allocation5 + $0x38] sm:$0xff] }
  0x67   :  { %v145_v48 = vld [vmem:[#allocation5 + $0x8] sm:$0xff]  ;;  %v144_v51 = vld [vmem:[#allocation5] sm:$0xff]  ;;  %v1406_v4 = vld [vmem:[#allocation10 + $0xb8] sm:$0xff]   ;;  %v155_v5 = vpack.c.bf16 %v151_v1, %v147_v63 }
  0x68   :  { %v149_v49 = vld [vmem:[#allocation5 + $0x28] sm:$0xff]  ;;  %v148_v52 = vld [vmem:[#allocation5 + $0x20] sm:$0xff]  ;;  %v1408_v7 = vld [vmem:[#allocation10 + $0xf0] sm:$0xff]  }
  0x69   :  { %1222 = vmatpush3.bf16.msra.mxu0 %v1384_v10  ;;  %1326 = vmatpush3.bf16.msra.mxu1 %v1394_v25  ;;  %v153_v50 = vpack.c.bf16 %v149_v49, %v145_v48  ;;  %v152_v53 = vpack.c.bf16 %v148_v52, %v144_v51  ;;  %v1119_v57 = vld [vmem:[%s1786_s3] ss:$0 sm:$0xff]  ;;  %v1410_v8 = vld [vmem:[#allocation10 + $0xb0] sm:$0xff]   ;;  %v1412_v9 = vld [vmem:[#allocation10 + $0xe8] sm:$0xff]  }
  0x6a   :  { %1223 = vmatprep.subr.bf16.mxu0 %v1385_v11  ;;  %1327 = vmatprep.subr.bf16.mxu1 %v1638_v0  ;;  %v1414_v10 = vld [vmem:[#allocation10 + $0xa8] sm:$0xff]   ;;  %v1416_v11 = vld [vmem:[#allocation10 + $0xe0] sm:$0xff]   ;;  %v1420_v13 = vld [vmem:[#allocation10 + $0xd8] sm:$0xff]  }
  0x6b   :  { %v1418_v12 = vld [vmem:[#allocation10 + $0xa0] sm:$0xff]   ;;  %v1424_v15 = vld [vmem:[#allocation10 + $0xd0] sm:$0xff]   ;;  %v1428_v18 = vld [vmem:[#allocation10 + $0x88] sm:$0xff]  }
  0x6c   :  { %v1426_v16 = vld [vmem:[#allocation10 + $0x90] sm:$0xff]   ;;  %v1431_v24 = vld [vmem:[#allocation11 + $0x38] sm:$0xff]  }
  0x6d   :  { %1224 = vmatpush3.bf16.msra.mxu0 %v1386_v14  ;;  %1328 = vmatpush3.bf16.msra.mxu1 %v1395_v27  ;;  %v1422_v14 = vld [vmem:[#allocation10 + $0x98] sm:$0xff]   ;;  %v146_v21 = vld [vmem:[#allocation5 + $0x10] sm:$0xff]  ;;  %v1434_v27 = vld [vmem:[#allocation11 + $0x20] sm:$0xff]  }
  0x6e   :  { %1225 = vmatprep.subr.bf16.mxu0 %v1387_v17  ;;  %1329 = vmatprep.subr.bf16.mxu1 %v1638_v0  ;;  %v1427_v17 = vld [vmem:[#allocation10 + $0xc8] sm:$0xff]   ;;  %v1432_v25 = vld [vmem:[#allocation11 + $0x30] sm:$0xff]  }
  0x71   :  { %1226 = vmatpush3.bf16.msra.mxu0 %v1388_v19  ;;  %1330 = vmatpush3.bf16.msra.mxu1 %v1396_v28  ;;  %v1429_v19 = vld [vmem:[#allocation10 + $0xc0] sm:$0xff]   ;;  %v1435_v28 = vld [vmem:[#allocation11 + $0x18] sm:$0xff]  }
  0x72   :  { %1227 = vmatprep.subr.bf16.mxu0 %v1389_v20  ;;  %1331 = vmatprep.subr.bf16.mxu1 %v1638_v0  ;;  %v1430_v20 = vld [vmem:[#allocation10 + $0x80] sm:$0xff]  }
  0x75   :  { %1228 = vmatpush3.bf16.msra.mxu0 %v1390_v22  ;;  %1332 = vmatpush3.bf16.msra.mxu1 %v1398_v30  ;;  %v150_v22 = vld [vmem:[#allocation5 + $0x30] sm:$0xff]  ;;  %v1437_v30 = vld [vmem:[#allocation11 + $0x8] sm:$0xff]  }
  0x76   :  { %1244 = vmatprep.subr.bf16.mxu0 %v1397_v29  ;;  %1333 = vmatprep.subr.bf16.mxu1 %v1638_v0  ;;  %v154_v23 = vpack.c.bf16 %v150_v22, %v146_v21  ;;  %v1436_v29 = vld [vmem:[#allocation11 + $0x10] sm:$0xff]  }
  0x78   :  { %324 = vmatmul.mubr.bf16.vlgmr.msra.gmra.mxu0 %v142_v26  ;;  %v1433_v26 = vld [vmem:[#allocation11 + $0x28] sm:$0xff]  }
  0x79   :  { %1245 = vmatpush3.bf16.msra.mxu0 %v1399_v31  ;;  %1334 = vmatpush3.bf16.msra.mxu1 %v1401_v33  ;;  %v1438_v31 = vld [vmem:[#allocation11] sm:$0xff]   ;;  %v1440_v33 = vld [vmem:[#allocation13 + $0x38] sm:$0xff]  }
  0x7a   :  { %1246 = vmatprep.subr.bf16.mxu0 %v1400_v32  ;;  %1266 = vmatprep.subr.bf16.mxu1 %v1404_v36  ;;  %v1439_v32 = vld [vmem:[#allocation13 + $0x78] sm:$0xff]   ;;  %v1443_v36 = vld [vmem:[#allocation13 + $0x68] sm:$0xff]  }
  0x7b   :  { %744 = vmatprep.mubr.bf16.mxu0 %v153_v50 }
  0x7d   :  { %1247 = vmatpush3.bf16.msra.mxu0 %v1402_v34  ;;  %v1441_v34 = vld [vmem:[#allocation13 + $0x70] sm:$0xff]  }
  0x7e   :  { %1248 = vmatprep.subr.bf16.mxu0 %v1403_v35  ;;  %v1442_v35 = vld [vmem:[#allocation13 + $0x30] sm:$0xff]  }
  0x81   :  { %1249 = vmatpush3.bf16.msra.mxu0 %v1405_v37  ;;  %v1444_v37 = vld [vmem:[#allocation13 + $0x28] sm:$0xff]  }
  0x82   :  { %1250 = vmatprep.subr.bf16.mxu0 %v1407_v38  ;;  %v1445_v38 = vld [vmem:[#allocation13 + $0x60] sm:$0xff]  }
  0x85   :  { %1251 = vmatpush3.bf16.msra.mxu0 %v1409_v39  ;;  %v1446_v39 = vld [vmem:[#allocation13 + $0x20] sm:$0xff]  }
  0x86   :  { %1252 = vmatprep.subr.bf16.mxu0 %v1411_v40  ;;  %v1447_v40 = vld [vmem:[#allocation13 + $0x58] sm:$0xff]  }
  0x89   :  { %1253 = vmatpush3.bf16.msra.mxu0 %v1413_v41  ;;  %v1136_v41 = vld [vmem:[%s1788_s5] ss:$0 sm:$0xff] }
  0x8a   :  { %1254 = vmatprep.subr.bf16.mxu0 %v1415_v42 }
  0x8d   :  { %1255 = vmatpush3.bf16.msra.mxu0 %v1417_v43 }
  0x8e   :  { %1256 = vmatprep.subr.bf16.mxu0 %v1419_v44 }
  0x91   :  { %1257 = vmatpush3.bf16.msra.mxu0 %v1421_v45 }
  0x92   :  { %1258 = vmatprep.subr.bf16.mxu0 %v1423_v46 }
  0x95   :  { %1259 = vmatpush3.bf16.msra.mxu0 %v1425_v47 }
  0x96   :  { %1339 = vmatprep.subr.bf16.mxu0 %v1638_v0 }
  0x98   :  { %745 = vmatmul.mubr.bf16.vlgmr.msra.gmra.mxu0 %v152_v53 }
  0x99   :  { %1355 = vmatprep.mubr.msk.bf16.mxu0 %vm1639_vm0, %v1638_v0  ;;  %1340 = vmatpush3.bf16.msra.mxu0 %v1431_v24 }
  0x9a   :  { %1341 = vmatprep.subr.bf16.mxu0 %v1638_v0 }
  0x9d   :  { %1342 = vmatpush3.bf16.msra.mxu0 %v1432_v25 }
  0x9e   :  { %1343 = vmatprep.subr.bf16.mxu0 %v1638_v0 }
  0xa1   :  { %1344 = vmatpush3.bf16.msra.mxu0 %v1433_v26 }
  0xa2   :  { %1345 = vmatprep.subr.bf16.mxu0 %v1638_v0 }
  0xa5   :  { %1346 = vmatpush3.bf16.msra.mxu0 %v1434_v27 }
  0xa6   :  { %1347 = vmatprep.subr.bf16.mxu0 %v1638_v0 }
  0xa9   :  { %1348 = vmatpush3.bf16.msra.mxu0 %v1435_v28  ;;  %v1187_v28 = vld [vmem:[%s1794_s11] ss:$0 sm:$0xff] }
  0xaa   :  { %1349 = vmatprep.subr.bf16.mxu0 %v1638_v0 }
  0xad   :  { %1350 = vmatpush3.bf16.msra.mxu0 %v1436_v29 }
  0xae   :  { %1351 = vmatprep.subr.bf16.mxu0 %v1638_v0 }
  0xb1   :  { %1352 = vmatpush3.bf16.msra.mxu0 %v1437_v30 }
  0xb2   :  { %1353 = vmatprep.subr.bf16.mxu0 %v1638_v0  ;;  %v1448_v0 = vld [vmem:[#allocation13 + $0x18] sm:$0xff]  }
  0xb5   :  { %1354 = vmatpush3.bf16.msra.mxu0 %v1438_v31 }
 0x138   :  { %v1229_v54 = vpop.f32.mrf.mxu0 }
 0x13a   :  { %v1230_v55 = vpop.f32.mrf.mxu0 }
 0x13b   :  { %v1231_v56 = vadd.f32 %v1230_v55, %v1229_v54 }
 0x13c   :  { %v1232_v58 = vpop.f32.mrf.mxu0 }
 0x13d   :  { %v326_v60 = vadd.f32 %v1231_v56, %v1119_v57 }
 0x13e   :  { %v1233_v59 = vpop.f32.mrf.mxu0 }
 0x13f   :  { %v1234_v61 = vadd.f32 %v1233_v59, %v1232_v58  ;;  %v332_v2 = vmax.f32 %v326_v60, 0.0 }
 0x141   :  { %v329_v62 = vadd.f32 %v1234_v61, %v1119_v57  ;;  %v1145_v57 = vld [vmem:[%s1790_s7] ss:$0 sm:$0xff] }
 0x143   :  { %v333_v3 = vmax.f32 %v329_v62, 0.0 }
 0x145   :  { %v334_v6 = vpack.c.bf16 %v333_v3, %v332_v2 }
 0x147   :  { %1336 = vmatmul.mubr.bf16.vlgmr.msra.gmra.mxu1 %v334_v6 }
 0x148   :  { %1267 = vmatpush3.bf16.msra.mxu1 %v1406_v4  ;;  %785 = vmatprep.mubr.bf16.mxu1 %v155_v5 }
 0x149   :  { %1268 = vmatprep.subr.bf16.mxu1 %v1408_v7 }
 0x14c   :  { %1269 = vmatpush3.bf16.msra.mxu1 %v1410_v8  ;;  %v1449_v8 = vld [vmem:[#allocation13 + $0x50] sm:$0xff]  }
 0x14d   :  { %1270 = vmatprep.subr.bf16.mxu1 %v1412_v9  ;;  %v1450_v9 = vld [vmem:[#allocation13 + $0x10] sm:$0xff]  }
 0x150   :  { %1271 = vmatpush3.bf16.msra.mxu1 %v1414_v10  ;;  %v1451_v10 = vld [vmem:[#allocation13 + $0x48] sm:$0xff]  }
 0x151   :  { %1272 = vmatprep.subr.bf16.mxu1 %v1416_v11  ;;  %v1452_v11 = vld [vmem:[#allocation13 + $0x8] sm:$0xff]  }
 0x154   :  { %1273 = vmatpush3.bf16.msra.mxu1 %v1418_v12  ;;  %v1453_v12 = vld [vmem:[#allocation13 + $0x40] sm:$0xff]  }
 0x155   :  { %1274 = vmatprep.subr.bf16.mxu1 %v1420_v13  ;;  %v1454_v13 = vld [vmem:[#allocation13] sm:$0xff]  }
 0x158   :  { %1275 = vmatpush3.bf16.msra.mxu1 %v1422_v14  ;;  %v1260_v51 = vpop.f32.mrf.mxu0  ;;  %v1178_v14 = vld [vmem:[%s1792_s9] ss:$0 sm:$0xff]  ;;  %s1640_s9 = smov [#allocation14]  }
 0x159   :  { %1276 = vmatprep.subr.bf16.mxu1 %v1424_v15  ;;  %s1104_s26 = sshll.u32 %s1640_s9, 4  ;;  %s1105_s26 = int_to_ptr.vmem [resolvable:$true] %s1104_s26 }
 0x15a   :  { %v1261_v52 = vpop.f32.mrf.mxu0  ;;  %s1595_s27 = scalar_lea.vmem %s1105_s26, 128  ;;  %p1600_p8 = scmp.lt.s32.totalorder %s1105_s26, %s1105_s26 }
 0x15b   :  { %v1262_v56 = vadd.f32 %v1261_v52, %v1260_v51  ;;  %p1596_p7 = scmp.ne.s32.totalorder %s1105_s26, %s1595_s27  ;;  %p1601_p9 = scmp.lt.s32.totalorder %s1595_s27, %s1595_s27 }
 0x15c   :  { %1277 = vmatpush3.bf16.msra.mxu1 %v1426_v16  ;;  %v1263_v53 = vpop.f32.mrf.mxu0 }
 0x15d   :  { %1278 = vmatprep.subr.bf16.mxu1 %v1427_v17  ;;  %v747_v62 = vadd.f32 %v1262_v56, %v1145_v57  ;;  %p1602_p10 = por %p1601_p9, %p1600_p8 }
 0x15e   :  { %v1264_v54 = vpop.f32.mrf.mxu0 }
 0x15f   :  { %v1265_v59 = vadd.f32 %v1264_v54, %v1263_v53  ;;  %p1603_p11 = pnand %p1602_p10, %p1596_p7 }
 0x160   :  { %1279 = vmatpush3.bf16.msra.mxu1 %v1428_v18 }
 0x161   :  { %1280 = vmatprep.subr.bf16.mxu1 %v1429_v19  ;;  %v750_v1 = vadd.f32 %v1265_v59, %v1145_v57 }
 0x164   :  { %1281 = vmatpush3.bf16.msra.mxu1 %v1430_v20 }
 0x165   :  { %1297 = vmatprep.subr.bf16.mxu1 %v1439_v32 }
 0x167   :  { %786 = vmatmul.mubr.bf16.vlgmr.msra.gmra.mxu1 %v154_v23 }
 0x168   :  { %1298 = vmatpush3.bf16.msra.mxu1 %v1440_v33 }
 0x169   :  { %1299 = vmatprep.subr.bf16.mxu1 %v1441_v34 }
 0x16c   :  { %1300 = vmatpush3.bf16.msra.mxu1 %v1442_v35 }
 0x16d   :  { %1301 = vmatprep.subr.bf16.mxu1 %v1443_v36 }
 0x170   :  { %1302 = vmatpush3.bf16.msra.mxu1 %v1444_v37 }
 0x171   :  { %1303 = vmatprep.subr.bf16.mxu1 %v1445_v38 }
 0x174   :  { %1304 = vmatpush3.bf16.msra.mxu1 %v1446_v39 }
 0x175   :  { %1305 = vmatprep.subr.bf16.mxu1 %v1447_v40 }
 0x178   :  { %1306 = vmatpush3.bf16.msra.mxu1 %v1448_v0 }
 0x179   :  { %1307 = vmatprep.subr.bf16.mxu1 %v1449_v8 }
 0x17c   :  { %1308 = vmatpush3.bf16.msra.mxu1 %v1450_v9 }
 0x17d   :  { %1309 = vmatprep.subr.bf16.mxu1 %v1451_v10 }
 0x180   :  { %1310 = vmatpush3.bf16.msra.mxu1 %v1452_v11 }
 0x181   :  { %1311 = vmatprep.subr.bf16.mxu1 %v1453_v12 }
 0x184   :  { %1312 = vmatpush3.bf16.msra.mxu1 %v1454_v13 }
 0x207   :  { %v440_v42 = vpop.f32.mrf.mxu1 }
 0x208   :  { %v441_v44 = vadd.f32 %v1136_v41, %v440_v42 }
 0x209   :  { %v1337_v43 = vpop.f32.mrf.mxu1 }
 0x20a   :  { %v447_v48 = vmax.f32 %v441_v44, 0.0 }
 0x20b   :  { %v443_v45 = vpop.f32.mrf.mxu1 }
 0x20c   :  { %v444_v46 = vadd.f32 %v1136_v41, %v443_v45 }
 0x20d   :  { %v1338_v47 = vpop.f32.mrf.mxu1 }
 0x20e   :  { %v448_v49 = vmax.f32 %v444_v46, 0.0 }
 0x210   :  { %v911_v50 = vpack.c.bf16 %v448_v49, %v447_v48 }
 0x227   :  { %v1282_v55 = vpop.f32.mrf.mxu1 }
 0x229   :  { %v1283_v58 = vpop.f32.mrf.mxu1 }
 0x22a   :  { %v1284_v60 = vadd.f32 %v1283_v58, %v1282_v55 }
 0x22b   :  { %v1285_v61 = vpop.f32.mrf.mxu1 }
 0x22c   :  { %v788_v2 = vadd.f32 %v1284_v60, %v747_v62 }
 0x22d   :  { %v1286_v63 = vpop.f32.mrf.mxu1 }
 0x22e   :  { %v1287_v3 = vadd.f32 %v1286_v63, %v1285_v61  ;;  %v794_v5 = vmax.f32 %v788_v2, 0.0 }
 0x230   :  { %v791_v4 = vadd.f32 %v1287_v3, %v750_v1 }
 0x232   :  { %v795_v6 = vmax.f32 %v791_v4, 0.0 }
 0x234   :  { %v796_v7 = vpack.c.bf16 %v795_v6, %v794_v5 }
 0x236   :  { %1356 = vmatmul.mubr.bf16.vlgmr.msra.gmra.mxu0 %v796_v7 }
 0x2f6   :  { %v902_v15 = vpop.f32.mrf.mxu0 }
 0x2f7   :  { %v903_v17 = vadd.f32 %v1178_v14, %v902_v15 }
 0x2f8   :  { %v1357_v16 = vpop.f32.mrf.mxu0 }
 0x2f9   :  { %v909_v21 = vmax.f32 %v903_v17, 0.0 }
 0x2fa   :  { %v905_v18 = vpop.f32.mrf.mxu0 }
 0x2fb   :  { %v906_v19 = vadd.f32 %v1178_v14, %v905_v18 }
 0x2fc   :  { %v1358_v20 = vpop.f32.mrf.mxu0 }
 0x2fd   :  { %v910_v22 = vmax.f32 %v906_v19, 0.0 }
 0x2ff   :  { %v912_v23 = vpack.c.bf16 %v910_v22, %v909_v21 }
 0x301   :  { %1080 = vmatprep.mubr.bf16.mxu1 %v912_v23 }
 0x302   :  { %1081 = vmatmul.mubr.bf16.vlgmr.msra.gmra.mxu1 %v911_v50 }
 0x3c2   :  { %v1313_v24 = vpop.f32.mrf.mxu1 }
 0x3c4   :  { %v1314_v25 = vpop.f32.mrf.mxu1 }
 0x3c5   :  { %v1315_v27 = vadd.f32 %v1314_v25, %v1313_v24 }
 0x3c6   :  { %v1316_v26 = vpop.f32.mrf.mxu1 }
 0x3c7   :  { %v1083_v31 = vadd.f32 %v1315_v27, %v1187_v28 }
 0x3c8   :  { %v1317_v29 = vpop.f32.mrf.mxu1 }
 0x3c9   :  { %v1318_v30 = vadd.f32 %v1317_v29, %v1316_v26 }
 0x3cb   :  { %v1086_v32 = vadd.f32 %v1318_v30, %v1187_v28 }
 0x3cd   :  { %v1211_v33 = vpack.c.bf16 %v1086_v32, %v1083_v31 }
 0x3cf   :  { %1212 = vst [vmem:[#allocation14] sm:$0xff] %v1211_v33  }
 0x3d0   :  { %1606 = shalt.err (!%p1603_p11)
}
 0x3d1   :  { %1110 = dma.vmem_to_hbm [thread:$0]  %s1105_s26, 128, %s1795_s12, [#allocation4], %s1630_s15, %s1630_s15, %s1631_s16  }
 0x3d2   :  { %1623 = dma.done.wait [#allocation4], 128  }
 0x3d3   :  { %1624 = vsyncadd [#allocation4], 4294967168 }
 0x3d4   :  { %1114 = vsyncpa [#allocation3], 1 }
 0x3d5   :  { %1115 = vsyncpa [#allocation6], 1 }
 0x3d6   :  { %1116 = vsyncpa [#allocation9], 1 }
 0x3d7   :  { %1117 = vsyncpa [#allocation12], 1 }
 0x3d8   :  { %1118 = vsyncpa [#allocation4], 1 }

</bundles_post_ra>
